<compile_context>
chip_gen: v5e
topology: v5e:2x2
jax: 0.10.0
libtpu: 0.0.40
codegen_flags: <defaults>
</compile_context>

<pallas_src>
import functools

import jax
import jax.numpy as jnp
from jax.experimental import pallas as pl
from jax.experimental.pallas import tpu as pltpu


# ----------------------------------------------------------------------------
# Kernel
# ----------------------------------------------------------------------------
def _attention_kernel(*refs, has_mask, has_add, vec_dtype):
    it = iter(refs)
    qw_ref = next(it)                             # (bb, 1, H)  f32, hoisted q @ Wq
    mem_ref = next(it)                            # (bb, N, H)  compute dtype (bf16)
    mask_ref = next(it) if has_mask else None     # (bb, N)
    add_ref = next(it) if has_add else None       # (bb, N, H)  compute dtype
    wm_ref = next(it)                             # (H, H)      compute dtype, resident
    v_ref = next(it)                              # (1, 1, H)   f32, resident, lane-dense
    ctx_ref = next(it)                            # (bb, H)     lane-dense
    attn_ref = next(it)                           # (bb, N)     f32, lane-dense

    bb, n, h = mem_ref.shape
    mem = mem_ref[...]                            # native (compute) dtype for the MXU

    # W_m projection: one MXU matmul with M = bb*N rows, f32 accumulation.
    # (Layout-free when N is sublane-aligned; keep N a multiple of 8 (f32) /
    #  16 (bf16) in production to avoid a relayout copy of the biggest tensor.)
    mw = jnp.dot(mem.reshape(bb * n, h), wm_ref[...],
                 preferred_element_type=jnp.float32).reshape(bb, n, h)

    # Additive energy + tanh in vec_dtype (bf16 on v6e/v7x EUP, f32 on v5e).
    energy = mw.astype(vec_dtype) + qw_ref[...].astype(vec_dtype)   # bcast over N
    if has_add:
        energy = energy + add_ref[...].astype(vec_dtype)
    t = jnp.tanh(energy)                                            # EUP

    # Scores: VPU multiply + lane reduction, accumulated in f32, kept
    # lane-dense as (bb, N).
    scores = jnp.sum((t * v_ref[...].astype(vec_dtype)).astype(jnp.float32),
                     axis=-1)

    if has_mask:
        scores = jnp.where(mask_ref[...] > 0, scores, -1e30)

    # Row softmax over the memory (lane) axis — f32 throughout.
    m = jnp.max(scores, axis=-1, keepdims=True)
    ex = jnp.exp(scores - m)
    denom = jnp.sum(ex, axis=-1, keepdims=True)
    attn = ex * pl.reciprocal(denom, approx=False)                  # (bb, N)
    attn_ref[...] = attn.astype(attn_ref.dtype)

    # Context: VPU multiply + XLU sublane reduction over N.  ctx is only 1/H of
    # the FLOPs, so keeping it off the MXU removes bb tiny (1,N)@(N,H) matvecs
    # and a per-step relayout of attn into a 3-D einsum operand.
    ctx = jnp.sum(mem.astype(jnp.float32) * attn[:, :, None], axis=1)   # (bb, H)
    ctx_ref[...] = ctx.astype(ctx_ref.dtype)


# ----------------------------------------------------------------------------
# Helpers
# ----------------------------------------------------------------------------
def _vmem_capacity_bytes():
    """Physical VMEM per core; conservative v7x-sized fallback if unavailable."""
    try:
        return int(pltpu.get_tpu_info().vmem_capacity_bytes)
    except Exception:
        return 64 * 1024 * 1024


def _supports_bf16_vector():
    """bf16 VPU/EUP exists on v6e/v7x; keep f32 vector math on v5e and older."""
    try:
        kind = jax.devices()[0].device_kind.lower()
    except Exception:
        return False
    return ("v6" in kind) or ("v7" in kind)


def _pick_block_b(B, N, H, itemsize, n_streams, budget):
    """Largest batch block that (a) keeps double-buffered streams + f32
    in-kernel intermediates within `budget` bytes of VMEM, (b) feeds the MXU
    ~1K M rows per step, (c) is a multiple of 8 (sublane tile for the 2-D
    (bb,N)/(bb,H) blocks).  Never exceeds its own VMEM-derived cap."""
    per_b = (2 * n_streams * N * H * itemsize      # double-buffered big input streams
             + 4 * N * H * 4                       # f32 mw/energy/t + ctx product
             + 2 * (N + 2 * H) * 4)                # qw / ctx / attn blocks, double-buffered
    cap = max(1, int(budget // max(per_b, 1)))
    target = max(1, 1024 // max(N, 1))             # ~1024 rows on the MXU M dim
    bb = min(B, cap, target)
    if bb >= B:
        return B                                   # single block: full-dim blocks are legal
    if bb >= 8:
        bb = (bb // 8) * 8                         # round DOWN: never exceed cap
    else:
        bb = 8                                     # smallest sublane-legal blocked tile
    return bb


# ----------------------------------------------------------------------------
# Wrapper
# ----------------------------------------------------------------------------
def attention_forward(query, memory, memory_mask=None, addictive_vec=None, *,
                      params, block_b=None, compute_dtype=jnp.bfloat16):
    """query [B,H], memory [B,N,H], memory_mask [B,N] or None,
    addictive_vec [B,N,H] or None.  Returns (context [B,H], attn [B,N])."""
    B, N, H = memory.shape
    Wq, Wm, v = params                            # (H,H), (H,H), (H,1)
    out_dtype = memory.dtype

    has_mask = memory_mask is not None
    has_add = addictive_vec is not None

    compute_dtype = jnp.dtype(compute_dtype)
    if compute_dtype == jnp.float32 or not _supports_bf16_vector():
        vec_dtype = jnp.float32                   # v5e/older: f32 VPU/EUP only
    else:
        vec_dtype = compute_dtype

    # Cast the big streamed tensors and the resident weight ONCE in the wrapper
    # (single XLA cast) instead of per grid step in the kernel.
    mem_c = memory.astype(compute_dtype)
    add_c = addictive_vec.astype(compute_dtype) if has_add else None
    wm_c = Wm.astype(compute_dtype)
    mask_c = memory_mask

    # Hoisted query projection: one [B,H]@[H,H] matmul, f32 accumulation,
    # shaped (B,1,H) so the kernel broadcasts it over the memory axis.
    qw = jnp.dot(query, Wq, preferred_element_type=jnp.float32).reshape(B, 1, H)
    v_row = v.reshape(1, 1, H).astype(jnp.float32)   # lane-dense row, not (H,1) column

    # ---- block size / padding (generation-aware VMEM budget) ----------------
    vmem_cap = _vmem_capacity_bytes()
    budget = int(vmem_cap * 0.55)                 # headroom for compiler scratch
    n_streams = 1 + int(has_add)                  # memory (+ addictive_vec)
    itemsize = compute_dtype.itemsize

    bb = block_b if block_b is not None else _pick_block_b(
        B, N, H, itemsize, n_streams, budget)

    if bb >= B:
        bb = B
        B_pad = B
    else:
        bb = max(8, (bb // 8) * 8)
        B_pad = ((B + bb - 1) // bb) * bb         # pad batch instead of asserting B % bb == 0

    if B_pad != B:
        pad = B_pad - B
        qw = jnp.pad(qw, ((0, pad), (0, 0), (0, 0)))
        mem_c = jnp.pad(mem_c, ((0, pad), (0, 0), (0, 0)))
        if has_mask:
            mask_c = jnp.pad(mask_c, ((0, pad), (0, 0)))
        if has_add:
            add_c = jnp.pad(add_c, ((0, pad), (0, 0), (0, 0)))

    grid = (B_pad // bb,)

    # ---- VMEM estimate including f32 in-kernel intermediates ----------------
    streamed = 2 * n_streams * bb * N * H * itemsize          # double-buffered inputs
    f32_tmp = 4 * bb * N * H * 4                              # mw/energy/t + ctx product
    small = 2 * bb * (N + 2 * H) * 4 + 2 * H * H * itemsize + 2 * H * 4
    est_bytes = streamed + f32_tmp + small
    vmem_limit = min(max(int(1.5 * est_bytes), 32 * 1024 * 1024),
                     int(vmem_cap * 0.75))                    # never above physical VMEM

    # ---- cost estimate for the XLA scheduler ---------------------------------
    flops = 2 * B_pad * N * H * H + 2 * B_pad * N * H
    transcendentals = B_pad * N * H + B_pad * N
    bytes_accessed = (n_streams * B_pad * N * H * itemsize
                      + B_pad * H * 4                          # qW in
                      + B_pad * (H * jnp.dtype(out_dtype).itemsize + N * 4)  # outputs
                      + 2 * H * H * itemsize + H * 4)
    cost = pl.CostEstimate(flops=flops, transcendentals=transcendentals,
                           bytes_accessed=bytes_accessed)

    # ---- specs ----------------------------------------------------------------
    in_specs = [
        pl.BlockSpec((bb, 1, H), lambda i: (i, 0, 0)),   # qW
        pl.BlockSpec((bb, N, H), lambda i: (i, 0, 0)),   # memory (compute dtype)
    ]
    inputs = [qw, mem_c]
    if has_mask:
        in_specs.append(pl.BlockSpec((bb, N), lambda i: (i, 0)))
        inputs.append(mask_c)
    if has_add:
        in_specs.append(pl.BlockSpec((bb, N, H), lambda i: (i, 0, 0)))
        inputs.append(add_c)
    in_specs += [
        pl.BlockSpec((H, H), lambda i: (0, 0)),          # W_m (resident)
        pl.BlockSpec((1, 1, H), lambda i: (0, 0, 0)),    # v row (resident)
    ]
    inputs += [wm_c, v_row]

    kernel = functools.partial(_attention_kernel, has_mask=has_mask,
                               has_add=has_add, vec_dtype=vec_dtype)

    ctx, attn = pl.pallas_call(
        kernel,
        out_shape=(
            jax.ShapeDtypeStruct((B_pad, H), out_dtype),
            jax.ShapeDtypeStruct((B_pad, N), jnp.float32),
        ),
        grid_spec=pltpu.PrefetchScalarGridSpec(
            num_scalar_prefetch=0,
            grid=grid,
            in_specs=in_specs,
            out_specs=[
                pl.BlockSpec((bb, H), lambda i: (i, 0)),     # context (lane-dense)
                pl.BlockSpec((bb, N), lambda i: (i, 0)),     # attn (lane-dense)
            ],
        ),
        compiler_params=pltpu.CompilerParams(
            dimension_semantics=("parallel",),
            vmem_limit_bytes=vmem_limit),
        cost_estimate=cost,
    )(*inputs)

    if B_pad != B:
        ctx = ctx[:B]
        attn = attn[:B]
    return ctx, attn


# ----------------------------------------------------------------------------
# Pure-JAX reference
# ----------------------------------------------------------------------------
def attention_reference(query, memory, memory_mask, addictive_vec, params):
    Wq, Wm, v = params
    qW = query @ Wq                                   # [B,H]
    mW = jnp.einsum('bnh,hk->bnk', memory, Wm)        # [B,N,H]
    t = jnp.tanh(qW[:, None, :] + mW + addictive_vec)
    scores = jnp.einsum('bnh,h->bn', t, v[:, 0])
    scores = jnp.where(memory_mask > 0, scores, -1e30)
    attn = jax.nn.softmax(scores, axis=-1)
    ctx = jnp.einsum('bn,bnh->bh', attn, memory)
    return ctx, attn


if __name__ == "__main__":
    B, N, H = 2, 8, 32

    key = jax.random.PRNGKey(0)
    k1, k2, k3, k4, k5, k6 = jax.random.split(key, 6)

    # nn.Linear(hidden, hidden, bias=False) x2, nn.Linear(hidden, 1, bias=False)
    Wq = jax.random.normal(k1, (H, H), jnp.float32) * 0.1
    Wm = jax.random.normal(k2, (H, H), jnp.float32) * 0.1
    v = jax.random.normal(k3, (H, 1), jnp.float32) * 0.1
    params = (Wq, Wm, v)

    query = jax.random.normal(k4, (B, H), jnp.float32)
    memory = jax.random.normal(k5, (B, N, H), jnp.float32)
    addictive_vec = jax.random.normal(k6, (B, N, H), jnp.float32) * 0.1
    lengths = jnp.array([[8], [5]], jnp.int32)            # second row has 3 padded slots
    memory_mask = (jnp.arange(N)[None, :] < lengths).astype(jnp.float32)

    ctx_ref, attn_ref = attention_reference(query, memory, memory_mask,
                                            addictive_vec, params)

    # 1) f32 compute path: tight numerical check.
    ctx, attn = attention_forward(query, memory, memory_mask, addictive_vec,
                                  params=params, compute_dtype=jnp.float32)
    jax.block_until_ready((ctx, attn))
    assert jnp.allclose(ctx, ctx_ref, atol=1e-4, rtol=1e-4), "context mismatch (f32)"
    assert jnp.allclose(attn, attn_ref, atol=1e-4, rtol=1e-4), "attn mismatch (f32)"
    assert jnp.allclose(jnp.sum(attn, axis=-1), 1.0, atol=1e-5), "softmax not normalized"

    # 2) default bf16-stream performance path (f32 accumulation / softmax).
    ctx_bf, attn_bf = attention_forward(query, memory, memory_mask, addictive_vec,
                                        params=params)
    jax.block_until_ready((ctx_bf, attn_bf))
    assert jnp.allclose(ctx_bf, ctx_ref, atol=3e-2, rtol=3e-2), "context mismatch (bf16)"
    assert jnp.allclose(attn_bf, attn_ref, atol=3e-2, rtol=3e-2), "attn mismatch (bf16)"
    assert jnp.allclose(jnp.sum(attn_bf, axis=-1), 1.0, atol=1e-3), "softmax not normalized (bf16)"

    # 3) specialized fast path: no mask / no addictive vector (no zero-filled
    #    [B,N,H] HBM traffic, no mask DMA).
    ctx2, attn2 = attention_forward(query, memory, None, None, params=params)
    jax.block_until_ready((ctx2, attn2))
    ones_mask = jnp.ones((B, N), jnp.float32)
    zeros_add = jnp.zeros((B, N, H), jnp.float32)
    ctx2_ref, attn2_ref = attention_reference(query, memory, ones_mask, zeros_add, params)
    assert jnp.allclose(ctx2, ctx2_ref, atol=3e-2, rtol=3e-2), "context mismatch (no mask/add)"
    assert jnp.allclose(attn2, attn2_ref, atol=3e-2, rtol=3e-2), "attn mismatch (no mask/add)"

    # 4) blocked + padded batch path: B=20 with block_b=8 -> pads to 24,
    #    3 grid steps, exercises the multi-step pipeline and the batch padding.
    B2 = 20
    kq, km, ka = jax.random.split(jax.random.PRNGKey(1), 3)
    query2 = jax.random.normal(kq, (B2, H), jnp.float32)
    memory2 = jax.random.normal(km, (B2, N, H), jnp.float32)
    add2 = jax.random.normal(ka, (B2, N, H), jnp.float32) * 0.1
    lengths2 = (jnp.arange(B2) % N + 1).reshape(B2, 1)
    mask2 = (jnp.arange(N)[None, :] < lengths2).astype(jnp.float32)
    ctx4, attn4 = attention_forward(query2, memory2, mask2, add2,
                                    params=params, block_b=8)
    jax.block_until_ready((ctx4, attn4))
    ctx4_ref, attn4_ref = attention_reference(query2, memory2, mask2, add2, params)
    assert jnp.allclose(ctx4, ctx4_ref, atol=3e-2, rtol=3e-2), "context mismatch (blocked/padded)"
    assert jnp.allclose(attn4, attn4_ref, atol=3e-2, rtol=3e-2), "attn mismatch (blocked/padded)"

    print("KERNEL_OK")
</pallas_src>

<mosaic_0001>
module attributes {stable_mosaic.version = 11 : i64} {
  func.func @_attention_kernel(%arg0: i32, %arg1: memref<2x1x32xf32, #tpu.memory_space<vmem>>, %arg2: memref<2x8x32xf32, #tpu.memory_space<vmem>>, %arg3: memref<2x8xf32, #tpu.memory_space<vmem>>, %arg4: memref<2x8x32xf32, #tpu.memory_space<vmem>>, %arg5: memref<32x32xf32, #tpu.memory_space<vmem>>, %arg6: memref<1x1x32xf32, #tpu.memory_space<vmem>>, %arg7: memref<2x32xf32, #tpu.memory_space<vmem>>, %arg8: memref<2x8xf32, #tpu.memory_space<vmem>>) attributes {dimension_semantics = [#tpu.dimension_semantics<parallel>], iteration_bounds = array<i64: 1>, scalar_prefetch = 0 : i64, scratch_operands = 0 : i64, tpu.core_type = #tpu.core_type<tc>, window_params = [{transform_indices = @transform_0, window_bounds = array<i64: 2, 1, 32>}, {transform_indices = @transform_1, window_bounds = array<i64: 2, 8, 32>}, {transform_indices = @transform_2, window_bounds = array<i64: 2, 8>}, {transform_indices = @transform_3, window_bounds = array<i64: 2, 8, 32>}, {pipeline_mode = #tpu.pipeline_mode<synchronous>, transform_indices = @transform_4, window_bounds = array<i64: 32, 32>}, {pipeline_mode = #tpu.pipeline_mode<synchronous>, transform_indices = @transform_5, window_bounds = array<i64: 1, 1, 32>}, {transform_indices = @transform_6, window_bounds = array<i64: 2, 32>}, {transform_indices = @transform_7, window_bounds = array<i64: 2, 8>}]} {
    %c0 = arith.constant 0 : index
    %c0_0 = arith.constant 0 : index
    %c0_1 = arith.constant 0 : index
    %0 = vector.load %arg2[%c0, %c0_0, %c0_1] : memref<2x8x32xf32, #tpu.memory_space<vmem>>, vector<2x8x32xf32>
    %1 = vector.shape_cast %0 : vector<2x8x32xf32> to vector<16x32xf32>
    %c0_2 = arith.constant 0 : index
    %c0_3 = arith.constant 0 : index
    %2 = vector.load %arg5[%c0_2, %c0_3] : memref<32x32xf32, #tpu.memory_space<vmem>>, vector<32x32xf32>
    %cst = arith.constant dense<0.000000e+00> : vector<16x32xf32>
    %3 = tpu.matmul %1, %2, %cst {dimension_numbers = #tpu.dot_dimension_numbers<[1], [0], [0], [1], [0, 0, 1, 1], [], []>} : vector<16x32xf32>, vector<32x32xf32>, vector<16x32xf32> -> vector<16x32xf32>
    %4 = vector.shape_cast %3 : vector<16x32xf32> to vector<2x8x32xf32>
    %c0_4 = arith.constant 0 : index
    %c0_5 = arith.constant 0 : index
    %c0_6 = arith.constant 0 : index
    %5 = vector.load %arg1[%c0_4, %c0_5, %c0_6] : memref<2x1x32xf32, #tpu.memory_space<vmem>>, vector<2x1x32xf32>
    %6 = vector.broadcast %5 : vector<2x1x32xf32> to vector<2x8x32xf32>
    %7 = arith.addf %4, %6 : vector<2x8x32xf32>
    %c0_7 = arith.constant 0 : index
    %c0_8 = arith.constant 0 : index
    %c0_9 = arith.constant 0 : index
    %8 = vector.load %arg4[%c0_7, %c0_8, %c0_9] : memref<2x8x32xf32, #tpu.memory_space<vmem>>, vector<2x8x32xf32>
    %9 = arith.addf %7, %8 : vector<2x8x32xf32>
    %10 = math.tanh %9 : vector<2x8x32xf32>
    %c0_10 = arith.constant 0 : index
    %c0_11 = arith.constant 0 : index
    %c0_12 = arith.constant 0 : index
    %11 = vector.load %arg6[%c0_10, %c0_11, %c0_12] : memref<1x1x32xf32, #tpu.memory_space<vmem>>, vector<1x1x32xf32>
    %12 = vector.broadcast %11 : vector<1x1x32xf32> to vector<2x8x32xf32>
    %13 = arith.mulf %10, %12 : vector<2x8x32xf32>
    %cst_13 = arith.constant dense<0.000000e+00> : vector<2x8xf32>
    %14 = vector.multi_reduction <add>, %13, %cst_13 [2] : vector<2x8x32xf32> to vector<2x8xf32>
    %c0_14 = arith.constant 0 : index
    %c0_15 = arith.constant 0 : index
    %15 = vector.load %arg3[%c0_14, %c0_15] : memref<2x8xf32, #tpu.memory_space<vmem>>, vector<2x8xf32>
    %cst_16 = arith.constant 0.000000e+00 : f32
    %16 = vector.broadcast %cst_16 : f32 to vector<2x8xf32>
    %17 = arith.cmpf ogt, %15, %16 : vector<2x8xf32>
    %cst_17 = arith.constant -1.000000e+30 : f32
    %18 = vector.broadcast %cst_17 : f32 to vector<2x8xf32>
    %19 = arith.select %17, %14, %18 : vector<2x8xi1>, vector<2x8xf32>
    %cst_18 = arith.constant dense<0xFF800000> : vector<2xf32>
    %20 = vector.multi_reduction <maximumf>, %19, %cst_18 [1] : vector<2x8xf32> to vector<2xf32>
    %21 = vector.shape_cast %20 : vector<2xf32> to vector<2x1xf32>
    %22 = vector.broadcast %21 : vector<2x1xf32> to vector<2x8xf32>
    %23 = arith.subf %19, %22 : vector<2x8xf32>
    %24 = math.exp %23 : vector<2x8xf32>
    %cst_19 = arith.constant dense<0.000000e+00> : vector<2xf32>
    %25 = vector.multi_reduction <add>, %24, %cst_19 [1] : vector<2x8xf32> to vector<2xf32>
    %26 = vector.shape_cast %25 : vector<2xf32> to vector<2x1xf32>
    %27 = tpu.reciprocal %26 : vector<2x1xf32> -> vector<2x1xf32>
    %28 = vector.broadcast %27 : vector<2x1xf32> to vector<2x8xf32>
    %29 = arith.mulf %24, %28 : vector<2x8xf32>
    %c0_20 = arith.constant 0 : index
    %c0_21 = arith.constant 0 : index
    %30 = vector.load %arg8[%c0_20, %c0_21] : memref<2x8xf32, #tpu.memory_space<vmem>>, vector<2x8xf32>
    tpu.vector_store %arg8[%c0_20, %c0_21], %29 {strides = array<i32>} : memref<2x8xf32, #tpu.memory_space<vmem>>, vector<2x8xf32>,
    %31 = vector.shape_cast %29 : vector<2x8xf32> to vector<2x8x1xf32>
    %32 = vector.broadcast %31 : vector<2x8x1xf32> to vector<2x8x32xf32>
    %33 = arith.mulf %0, %32 : vector<2x8x32xf32>
    %cst_22 = arith.constant dense<0.000000e+00> : vector<2x32xf32>
    %34 = vector.multi_reduction <add>, %33, %cst_22 [1] : vector<2x8x32xf32> to vector<2x32xf32>
    %c0_23 = arith.constant 0 : index
    %c0_24 = arith.constant 0 : index
    %35 = vector.load %arg7[%c0_23, %c0_24] : memref<2x32xf32, #tpu.memory_space<vmem>>, vector<2x32xf32>
    tpu.vector_store %arg7[%c0_23, %c0_24], %34 {strides = array<i32>} : memref<2x32xf32, #tpu.memory_space<vmem>>, vector<2x32xf32>,
    return
  }
  func.func @transform_0(%arg0: i32) -> (i32, i32, i32) {
    %c0_i32 = arith.constant 0 : i32
    %c0_i32_0 = arith.constant 0 : i32
    %c0_i32_1 = arith.constant 0 : i32
    return %arg0, %c0_i32, %c0_i32_0 : i32, i32, i32
  }
  func.func @transform_1(%arg0: i32) -> (i32, i32, i32) {
    %c0_i32 = arith.constant 0 : i32
    %c0_i32_0 = arith.constant 0 : i32
    %c0_i32_1 = arith.constant 0 : i32
    return %arg0, %c0_i32, %c0_i32_0 : i32, i32, i32
  }
  func.func @transform_2(%arg0: i32) -> (i32, i32) {
    %c0_i32 = arith.constant 0 : i32
    %c0_i32_0 = arith.constant 0 : i32
    return %arg0, %c0_i32 : i32, i32
  }
  func.func @transform_3(%arg0: i32) -> (i32, i32, i32) {
    %c0_i32 = arith.constant 0 : i32
    %c0_i32_0 = arith.constant 0 : i32
    %c0_i32_1 = arith.constant 0 : i32
    return %arg0, %c0_i32, %c0_i32_0 : i32, i32, i32
  }
  func.func @transform_4(%arg0: i32) -> (i32, i32) {
    %c0_i32 = arith.constant 0 : i32
    %c0_i32_0 = arith.constant 0 : i32
    %c0_i32_1 = arith.constant 0 : i32
    return %c0_i32, %c0_i32_0 : i32, i32
  }
  func.func @transform_5(%arg0: i32) -> (i32, i32, i32) {
    %c0_i32 = arith.constant 0 : i32
    %c0_i32_0 = arith.constant 0 : i32
    %c0_i32_1 = arith.constant 0 : i32
    %c0_i32_2 = arith.constant 0 : i32
    return %c0_i32, %c0_i32_0, %c0_i32_1 : i32, i32, i32
  }
  func.func @transform_6(%arg0: i32) -> (i32, i32) {
    %c0_i32 = arith.constant 0 : i32
    %c0_i32_0 = arith.constant 0 : i32
    return %arg0, %c0_i32 : i32, i32
  }
  func.func @transform_7(%arg0: i32) -> (i32, i32) {
    %c0_i32 = arith.constant 0 : i32
    %c0_i32_0 = arith.constant 0 : i32
    return %arg0, %c0_i32 : i32, i32
  }
}

</mosaic_0001>

<bundles_post_ra>
// kernel: tpu_custom_call.1
= control target key start
LH: loop header
LB: loop body
LE: loop exit
PB: predicated region body
PF: predicated region fallthrough
CT: control target
= control target key end

     0   :  { %13 = vsyncpa [#allocation3], 0  ;;  %s587_s0 = inlined_call_operand.hbm [shape: f32[2,1,32], index: 0, kind: input, shape index: {}]   ;;  %s588_s1 = inlined_call_operand.hbm [shape: f32[2,8,32], index: 1, kind: input, shape index: {}]   ;;  %s589_s2 = inlined_call_operand.hbm [shape: f32[2,8], index: 2, kind: input, shape index: {}]   ;;  %s590_s3 = inlined_call_operand.hbm [shape: f32[2,8,32], index: 3, kind: input, shape index: {}]   ;;  %s591_s4 = inlined_call_operand.hbm [shape: f32[32,32], index: 4, kind: input, shape index: {}]   ;;  %s592_s5 = inlined_call_operand.vmem [shape: f32[1,1,32], index: 5, kind: input, shape index: {}]   ;;  %s593_s6 = inlined_call_operand.hbm [shape: f32[2,32], index: 6, kind: output, shape index: {0}]   ;;  %s594_s7 = inlined_call_operand.hbm [shape: f32[2,8], index: 7, kind: output, shape index: {1}]  }
   0x1   :  { %14 = vsyncpa [#allocation6], 0 }
   0x2   :  { %15 = vsyncpa [#allocation9], 0 }
   0x3   :  { %16 = vsyncpa [#allocation4], 0  ;;  %s35_s26 = sshll.u32 %s588_s1, 4  ;;  %s36_s26 = int_to_ptr.hbm [resolvable:$true] %s35_s26 }
   0x4   :  { %17 = vsyncpa [#allocation13], 0  ;;  %s484_s27 = smov [#allocation5]   ;;  %s59_s8 = sshll.u32 %s590_s3, 4  ;;  %s60_s8 = int_to_ptr.hbm [resolvable:$true] %s59_s8 }
   0x5   :  { %s37_s28 = sshll.u32 %s484_s27, 4  ;;  %s485_s9 = smov 128   ;;  %s38_s28 = int_to_ptr.vmem [resolvable:$true] %s37_s28 }
   0x6   :  { %s486_s10 = smov 8   ;;  %s487_s11 = smov [#allocation8]  }
   0x7   :  { %43 = dma.hbm_to_vmem [thread:$0]  %s36_s26, 256, %s38_s28, [#allocation6], %s485_s9, %s485_s9, %s486_s10  }
   0x8   :  { %s61_s12 = sshll.u32 %s487_s11, 4  ;;  %s22_s14 = sshll.u32 %s587_s0, 4  ;;  %s62_s12 = int_to_ptr.vmem [resolvable:$true] %s61_s12  ;;  %s23_s14 = int_to_ptr.hbm [resolvable:$true] %s22_s14 }
   0x9   :  { %67 = dma.hbm_to_vmem [thread:$0]  %s60_s8, 256, %s62_s12, [#allocation9], %s485_s9, %s485_s9, %s486_s10  }
   0xa   :  { %s488_s3 = smov [#allocation2]   ;;  %s49_s18 = sshll.u32 %s589_s2, 4  ;;  %s50_s18 = int_to_ptr.hbm [resolvable:$true] %s49_s18 }
   0xb   :  { %s24_s15 = sshll.u32 %s488_s3, 4  ;;  %s489_s19 = smov 16   ;;  %s25_s15 = int_to_ptr.vmem [resolvable:$true] %s24_s15 }
   0xc   :  { %s490_s20 = smov 1   ;;  %s491_s21 = smov [#allocation7]  }
   0xd   :  { %30 = dma.hbm_to_vmem [thread:$0]  %s23_s14, 32, %s25_s15, [#allocation3], %s489_s19, %s489_s19, %s490_s20  }
   0xe   :  { %s51_s22 = sshll.u32 %s491_s21, 4  ;;  %s72_s24 = sshll.u32 %s591_s4, 4  ;;  %s52_s22 = int_to_ptr.vmem [resolvable:$true] %s51_s22  ;;  %s73_s24 = int_to_ptr.hbm [resolvable:$true] %s72_s24 }
   0xf   :  { %54 = dma.hbm_to_vmem [thread:$0]  %s50_s18, 32, %s52_s22, [#allocation6]  }
  0x10   :  { %s492_s25 = smov [#allocation10]  }
  0x11   :  { %s74_s26 = sshll.u32 %s492_s25, 4  ;;  %s75_s26 = int_to_ptr.vmem [resolvable:$true] %s74_s26 }
  0x12   :  { %80 = dma.hbm_to_vmem [thread:$0]  %s73_s24, 512, %s75_s26, [#allocation9], %s485_s9, %s485_s9, %s486_s10  }
  0x13   :  { %474 = dma.done.wait [#allocation3], 32  }
  0x14   :  { %475 = vsyncadd [#allocation3], 4294967264 }
  0x15   :  { %476 = dma.done.wait [#allocation6], 288  }
  0x16   :  { %477 = vsyncadd [#allocation6], 4294967008 }
  0x17   :  { %478 = dma.done.wait [#allocation9], 768  }
  0x18   :  { %479 = vsyncadd [#allocation9], 4294966528  ;;  %v108_v0 = vld [vmem:[#allocation10 + $0x18] sm:$0xff]  ;;  %v107_v1 = vld [vmem:[#allocation10 + $0x10] sm:$0xff]  ;;  %vm109_vm0 = vcmask 261120   ;;  %v171_v24 = vlaneseq  ;;  %vm175_vm1 = vcmask 1041409  }
  0x19   :  { %128 = vmatpush.msra.mxu0 %v108_v0  ;;  %v106_v2 = vld [vmem:[#allocation10 + $0x8] sm:$0xff]  ;;  %278 = vmatpush.msra.mxu1 %v108_v0  ;;  %v105_v3 = vld [vmem:[#allocation10] sm:$0xff]  ;;  %v295_v6 = vld [vmem:[#allocation2] ss:$0 sm:$0xff]  ;;  %vm179_vm3 = vcmask 58368   ;;  %s259_s30 = sshll.u32 %s594_s7, 4  ;;  %s260_s30 = int_to_ptr.hbm [resolvable:$true] %s259_s30 }
  0x1a   :  { %v559_v4 = vld [vmem:[#allocation5] sm:$0xff]  ;;  %v561_v5 = vld [vmem:[#allocation5 + $0x8] sm:$0xff]  ;;  %v296_v7 = vld [vmem:[#allocation2 + $0x1] ss:$0 sm:$0xff]  ;;  %v172_v25 = vand.u32 127, %v171_v24  ;;  %v207_v38 = vshrl.u32 %v171_v24, 7 }
  0x1b   :  { %129 = vmatpush.msra.mxu0 %v107_v1  ;;  %279 = vmatpush.msra.mxu1 %v107_v1  ;;  %v149_v9 = vld [vmem:[#allocation8] sm:$0xff]  ;;  %v150_v11 = vld [vmem:[#allocation8 + $0x8] sm:$0xff]  ;;  %v167_v26 = vld [vmem:[#allocation7] sm:$0x3]  ;;  %s494_s7 = smov [#allocation11]   ;;  %s248_s11 = sshll.u32 %s593_s6, 4  ;;  %s249_s11 = int_to_ptr.hbm [resolvable:$true] %s248_s11 }
  0x1c   :  { %v297_v16 = vld [vmem:[%s592_s5] ss:$0 sm:$0xff]  ;;  %vm168_vm2 = vcmp.gt.f32.partialorder %v167_v26, 0.0  ;;  %293 = vset.pattern.permute.xlu2 %v207_v38  ;;  %294 = vset.pattern.permute.xlu0 %v207_v38  ;;  %s493_s5 = smov [#allocation12]   ;;  %s246_s8 = sshll.u32 %s494_s7, 4  ;;  %vm239_vm8 = vcmask 254976   ;;  %s247_s8 = int_to_ptr.vmem [resolvable:$true] %s246_s8 }
  0x1d   :  { %130 = vmatpush.msra.mxu0 %v106_v2  ;;  %280 = vmatpush.msra.mxu1 %v106_v2  ;;  %s257_s27 = sshll.u32 %s493_s5, 4  ;;  %s258_s27 = int_to_ptr.vmem [resolvable:$true] %s257_s27 }
  0x1f   :  { %131 = vmatpush.msra.mxu0 %v105_v3  ;;  %281 = vmatpush.msra.mxu1 %v105_v3 }
  0x20   :  { %276 = vmatmul.msk.f32.vlgmr.msra.gmra.mxu0 %vm109_vm0, %v559_v4  ;;  %277 = vmatmul.msk.f32.vlgmr.msra.gmra.mxu1 %vm109_vm0, %v561_v5 }
  0x9d   :  { %v133_v8 = vpop.f32.mrf.mxu0  ;;  %v136_v10 = vpop.f32.mrf.mxu1 }
  0x9e   :  { %v147_v12 = vadd.f32 %v295_v6, %v133_v8  ;;  %v148_v13 = vadd.f32 %v296_v7, %v136_v10 }
  0xa0   :  { %v151_v14 = vadd.f32 %v149_v9, %v147_v12  ;;  %v152_v15 = vadd.f32 %v150_v11, %v148_v13 }
  0xa2   :  { %298 = vtanh.f32 %v151_v14 }
  0xa3   :  { %300 = vtanh.f32 %v152_v15 }
  0xa8   :  { %v299_v17 = vpop.eup %298 }
  0xa9   :  { %v159_v18 = vmul.f32 %v299_v17, %v297_v16  ;;  %v301_v19 = vpop.eup %300 }
  0xaa   :  { %v160_v21 = vmul.f32 %v301_v19, %v297_v16 }
  0xab   :  { %v161_v20 = vsel %vm109_vm0, %v159_v18, 0.0 }
  0xac   :  { %162 = vadd.xlane.f32.xlu0 %v161_v20  ;;  %v164_v22 = vsel %vm109_vm0, %v160_v21, 0.0 }
  0xb4   :  { %165 = vadd.xlane.f32.xlu0 %v164_v22 }
 0x11f   :  { %v163_v23 = vpop.xlane.xlu0 %162 }
 0x120   :  { %v173_v28 = vperm.slane %v163_v23, %v172_v25 }
 0x127   :  { %v166_v27 = vpop.xlane.xlu0 %165 }
 0x128   :  { %v174_v29 = vperm.slane %v166_v27, %v172_v25 }
 0x12a   :  { %v176_v30 = vsel %vm175_vm1, %v174_v29, %v173_v28 }
 0x12b   :  { %v178_v31 = vsel %vm168_vm2, %v176_v30, -1e+30 }
 0x12c   :  { %v180_v32 = vsel %vm179_vm3, %v178_v31, -inf }
 0x12d   :  { %181 = vmax.xlane.f32.xlu1 %v180_v32 }
 0x1a0   :  { %v182_v33 = vpop.xlane.xlu1 %181 }
 0x1a1   :  { %v183_v34 = vsub.f32 %v178_v31, %v182_v33 }
 0x1a3   :  { %v184_v35 = vmul.f32 1.442695, %v183_v34 }
 0x1a5   :  { %302 = vpow2.f32 %v184_v35 }
 0x1ab   :  { %v303_v36 = vpop.eup %302 }
 0x1ac   :  { %v186_v37 = vsel %vm179_vm3, %v303_v36, 0.0 }
 0x1ad   :  { %187 = vadd.xlane.f32.xlu1 %v186_v37 }
 0x220   :  { %v188_v39 = vpop.xlane.xlu1 %187 }
 0x221   :  { %304 = vrcp.f32 %v188_v39  ;;  %v200_v43 = vand.u32 2147483648, %v188_v39  ;;  %v198_v45 = vand.u32 2147483647, %v188_v39  ;;  %vm194_vm5 = vweird.f32 %v188_v39 }
 0x223   :  { %v201_v47 = vor.u32 1.1754944e-38, %v200_v43  ;;  %vm199_vm7 = vcmp.eq.f32.partialorder %v198_v45, 8.507059e+37 }
 0x227   :  { %v305_v40 = vpop.eup %304 }
 0x228   :  { %v190_v41 = vmul.f32 %v305_v40, %v188_v39  ;;  %vm195_vm4 = vweird.f32 %v305_v40 }
 0x229   :  { %vm196_vm6 = vmor %vm194_vm5, %vm195_vm4 }
 0x22a   :  { %v191_v42 = vsub.f32 1.0, %v190_v41 }
 0x22c   :  { %v192_v44 = vmul.f32 %v305_v40, %v191_v42 }
 0x22e   :  { %v193_v46 = vadd.f32 %v305_v40, %v192_v44 }
 0x230   :  { %v197_v48 = vsel %vm196_vm6, %v305_v40, %v193_v46 }
 0x231   :  { %v202_v49 = vsel %vm199_vm7, %v201_v47, %v197_v48 }
 0x232   :  { %v203_v50 = vmul.f32 %v303_v36, %v202_v49 }
 0x234   :  { %v205_v51 = vperm.slane %v203_v50, 0  ;;  %204 = vst.msk [vmem:[#allocation12] sm:$0x3] %vm179_vm3, %v203_v50  ;;  %v212_v52 = vperm.slane %v203_v50, 1 }
 0x235   :  { %262 = dma.vmem_to_hbm [thread:$0]  %s258_s27, 32, %s260_s30, [#allocation13]  }
 0x236   :  { %210 = vperm.xlu2 %293, %v205_v51  }
 0x23e   :  { %217 = vperm.xlu2 %293, %v212_v52  }
 0x290   :  { %v211_v53 = vpop.permute.xlu2 %210 }
 0x291   :  { %v219_v54 = vmul.f32 %v211_v53, %v559_v4 }
 0x293   :  { %v221_v55 = vsel %vm109_vm0, %v219_v54, 0.0 }
 0x294   :  { %v222_v56 = vrot.slane %v221_v55, 4 }
 0x296   :  { %v223_v57 = vadd.f32 %v222_v56, %v221_v55 }
 0x298   :  { %v218_v58 = vpop.permute.xlu2 %217  ;;  %v224_v60 = vrot.slane %v223_v57, 2 }
 0x299   :  { %v220_v59 = vmul.f32 %v218_v58, %v561_v5 }
 0x29a   :  { %v225_v63 = vadd.f32 %v224_v60, %v223_v57 }
 0x29b   :  { %v228_v61 = vsel %vm109_vm0, %v220_v59, 0.0 }
 0x29c   :  { %v229_v62 = vrot.slane %v228_v61, 4  ;;  %v226_v2 = vrot.slane %v225_v63, 1 }
 0x29e   :  { %v230_v0 = vadd.f32 %v229_v62, %v228_v61  ;;  %v227_v4 = vadd.f32 %v226_v2, %v225_v63 }
 0x2a0   :  { %v231_v1 = vrot.slane %v230_v0, 2 }
 0x2a2   :  { %v232_v3 = vadd.f32 %v231_v1, %v230_v0 }
 0x2a4   :  { %v233_v6 = vrot.slane %v232_v3, 1 }
 0x2a6   :  { %v234_v7 = vadd.f32 %v233_v6, %v232_v3 }
 0x2a8   :  { %v237_v5 = vsel %vm175_vm1, %v234_v7, %v227_v4 }
 0x2a9   :  { %240 = vst.msk [vmem:[#allocation11] sm:$0x3] %vm239_vm8, %v237_v5 }
 0x2aa   :  { %251 = dma.vmem_to_hbm [thread:$0]  %s247_s8, 32, %s249_s11, [#allocation4]  }
 0x2ab   :  { %480 = dma.done.wait [#allocation4], 32  }
 0x2ac   :  { %481 = vsyncadd [#allocation4], 4294967264 }
 0x2ad   :  { %482 = dma.done.wait [#allocation13], 32  }
 0x2ae   :  { %483 = vsyncadd [#allocation13], 4294967264 }
 0x2af   :  { %271 = vsyncpa [#allocation3], 1 }
 0x2b0   :  { %272 = vsyncpa [#allocation6], 1 }
 0x2b1   :  { %273 = vsyncpa [#allocation9], 1 }
 0x2b2   :  { %274 = vsyncpa [#allocation4], 1 }
 0x2b3   :  { %275 = vsyncpa [#allocation13], 1 }

</bundles_post_ra>
